<compile_context>
chip_gen: v7x
topology: tpu7x:2x2x1
jax: 0.10.0
libtpu: 0.0.40
codegen_flags: <defaults>
</compile_context>

<pallas_src>
import jax
import jax.numpy as jnp
from jax.experimental import pallas as pl
from jax.experimental.pallas import tpu as pltpu

N1 = 128
N2 = 64
OUT_LANES = 128          # lane-dense padded width of the fc3 output
MAX_BATCH_TILE = 4096    # ~6 MiB of double-buffered VMEM at this tile size


def _actor_kernel(x_ref, w1_ref, b1_ref, w2_ref, b2_ref, w3_ref, b3_ref, o_ref):
    # One batch tile per grid step; the whole 3-layer MLP runs on-chip.
    # Matmul operands are bf16 (MXU-native); accumulation + elementwise in f32.
    x = x_ref[...]
    h1 = jnp.dot(x, w1_ref[...], preferred_element_type=jnp.float32) + b1_ref[...]
    h1 = jnp.maximum(h1, 0.0).astype(jnp.bfloat16)
    h2 = jnp.dot(h1, w2_ref[...], preferred_element_type=jnp.float32) + b2_ref[...]
    h2 = jnp.maximum(h2, 0.0).astype(jnp.bfloat16)
    a = jnp.dot(h2, w3_ref[...], preferred_element_type=jnp.float32) + b3_ref[...]
    o_ref[...] = jnp.tanh(a).astype(o_ref.dtype)


def _round_up(n, m):
    return ((n + m - 1) // m) * m


def actor_forward(x, params, *, max_batch_tile=MAX_BATCH_TILE):
    """Pallas implementation of Actor.forward.

    x:      (B, state_dim) float32
    params: dict with w1 (state_dim,128), b1 (1,128), w2 (128,64), b2 (1,64),
            w3 (64,action_dim), b3 (1,action_dim) — weights stored (in, out).
    returns (B, action_dim) float32
    """
    x = x.astype(jnp.float32)
    B, D = x.shape
    A = params["w3"].shape[1]

    # ---- operand preparation (once, outside the kernel) ---------------------
    w1 = params["w1"].astype(jnp.bfloat16)
    w2 = params["w2"].astype(jnp.bfloat16)
    b1 = params["b1"].astype(jnp.float32)
    b2 = params["b2"].astype(jnp.float32)
    # Zero-pad fc3 to 128 output columns: unmasked (lane-dense) stores and an
    # MXU-aligned N.  tanh(0 + 0) = 0 in the padded columns, sliced off below.
    w3 = jnp.zeros((N2, OUT_LANES), jnp.bfloat16).at[:, :A].set(
        params["w3"].astype(jnp.bfloat16))
    b3 = jnp.zeros((1, OUT_LANES), jnp.float32).at[:, :A].set(
        params["b3"].astype(jnp.float32))

    # ---- batch tile selection ------------------------------------------------
    # Size the tile from the number of grid steps (avoids padding blowup), keep
    # it a multiple of 16 (bf16 sublane packing), and keep >= 2 grid steps for
    # large batches so both v7x TensorCores get work.
    grid_n = pl.cdiv(B, max_batch_tile)
    if B >= 1024:
        grid_n = max(grid_n, 2)
    tb = _round_up(pl.cdiv(B, grid_n), 16)
    b_pad = _round_up(B, tb)
    grid_n = b_pad // tb

    x_p = x
    if b_pad != B:
        x_p = jnp.pad(x_p, ((0, b_pad - B), (0, 0)))
    x_p = x_p.astype(jnp.bfloat16)

    def const_spec(arr):
        # Constant block index -> fetched once, stays VMEM-resident; Pallas
        # skips DMA re-issue for block indices that do not change per step.
        nd = arr.ndim
        return pl.BlockSpec(arr.shape, lambda i, _nd=nd: (0,) * _nd)

    out = pl.pallas_call(
        _actor_kernel,
        out_shape=jax.ShapeDtypeStruct((b_pad, OUT_LANES), jnp.float32),
        grid=(grid_n,),
        in_specs=[
            pl.BlockSpec((tb, D), lambda i: (i, 0)),   # x: tiled over batch
            const_spec(w1), const_spec(b1),
            const_spec(w2), const_spec(b2),
            const_spec(w3), const_spec(b3),
        ],
        out_specs=pl.BlockSpec((tb, OUT_LANES), lambda i: (i, 0)),
        compiler_params=pltpu.CompilerParams(
            dimension_semantics=("parallel",),
            vmem_limit_bytes=48 * 1024 * 1024,   # headroom inside v7x's 64 MiB
        ),
    )(x_p, w1, b1, w2, b2, w3, b3)

    return out[:B, :A]


def init_actor_params(key, state_dim, action_dim):
    """Deterministic init mimicking PyTorch nn.Linear default (uniform +/- 1/sqrt(fan_in)).
    Weights stored transposed: (in_features, out_features)."""
    dims = [(state_dim, N1), (N1, N2), (N2, action_dim)]
    params = {}
    for i, (fi, fo) in enumerate(dims, start=1):
        key, kw, kb = jax.random.split(key, 3)
        bound = 1.0 / jnp.sqrt(jnp.float32(fi))
        params[f"w{i}"] = jax.random.uniform(kw, (fi, fo), jnp.float32, -bound, bound)
        params[f"b{i}"] = jax.random.uniform(kb, (1, fo), jnp.float32, -bound, bound)
    return params


def _reference_forward(x, params):
    # Pure f32 reference (matches the PyTorch module up to bf16 matmul rounding).
    h1 = jax.nn.relu(x @ params["w1"] + params["b1"])
    h2 = jax.nn.relu(h1 @ params["w2"] + params["b2"])
    return jnp.tanh(h2 @ params["w3"] + params["b3"])


if __name__ == "__main__":
    key = jax.random.PRNGKey(0)
    k_state, k_params = jax.random.split(key, 2)

    batch = 8
    state_dim = 16
    action_dim = 8

    state = jax.random.normal(k_state, (batch, state_dim), jnp.float32)
    params = init_actor_params(k_params, state_dim, action_dim)

    actions = actor_forward(state, params)
    actions = jax.block_until_ready(actions)
    actions_ref = _reference_forward(state, params)
    assert actions.shape == (batch, action_dim)
    # bf16 matmul operands -> ~1e-2 deviation vs. the f32 reference.
    assert jnp.allclose(actions, actions_ref, atol=2e-2, rtol=2e-2)

    # Non-tile-aligned larger batch (exercises padding).
    big_state = jax.random.normal(jax.random.PRNGKey(1), (1000, state_dim), jnp.float32)
    big_out = jax.block_until_ready(actor_forward(big_state, params))
    assert jnp.allclose(big_out, _reference_forward(big_state, params), atol=2e-2, rtol=2e-2)

    # Large batch (exercises the grid>=2 / megacore-friendly path).
    huge_state = jax.random.normal(jax.random.PRNGKey(2), (2500, state_dim), jnp.float32)
    huge_out = jax.block_until_ready(actor_forward(huge_state, params))
    assert jnp.allclose(huge_out, _reference_forward(huge_state, params), atol=2e-2, rtol=2e-2)

    print("KERNEL_OK")
</pallas_src>

<mosaic_0001>
module attributes {stable_mosaic.version = 11 : i64} {
  func.func @_actor_kernel(%arg0: i32, %arg1: memref<16x16xbf16, #tpu.memory_space<vmem>>, %arg2: memref<16x128xbf16, #tpu.memory_space<vmem>>, %arg3: memref<1x128xf32, #tpu.memory_space<vmem>>, %arg4: memref<128x64xbf16, #tpu.memory_space<vmem>>, %arg5: memref<1x64xf32, #tpu.memory_space<vmem>>, %arg6: memref<64x128xbf16, #tpu.memory_space<vmem>>, %arg7: memref<1x128xf32, #tpu.memory_space<vmem>>, %arg8: memref<16x128xf32, #tpu.memory_space<vmem>>) attributes {dimension_semantics = [#tpu.dimension_semantics<parallel>], iteration_bounds = array<i64: 1>, scalar_prefetch = 0 : i64, scratch_operands = 0 : i64, tpu.core_type = #tpu.core_type<tc>, window_params = [{transform_indices = @transform_0, window_bounds = array<i64: 16, 16>}, {pipeline_mode = #tpu.pipeline_mode<synchronous>, transform_indices = @transform_1, window_bounds = array<i64: 16, 128>}, {pipeline_mode = #tpu.pipeline_mode<synchronous>, transform_indices = @transform_2, window_bounds = array<i64: 1, 128>}, {pipeline_mode = #tpu.pipeline_mode<synchronous>, transform_indices = @transform_3, window_bounds = array<i64: 128, 64>}, {pipeline_mode = #tpu.pipeline_mode<synchronous>, transform_indices = @transform_4, window_bounds = array<i64: 1, 64>}, {pipeline_mode = #tpu.pipeline_mode<synchronous>, transform_indices = @transform_5, window_bounds = array<i64: 64, 128>}, {pipeline_mode = #tpu.pipeline_mode<synchronous>, transform_indices = @transform_6, window_bounds = array<i64: 1, 128>}, {transform_indices = @transform_7, window_bounds = array<i64: 16, 128>}]} {
    %c0 = arith.constant 0 : index
    %c0_0 = arith.constant 0 : index
    %0 = vector.load %arg1[%c0, %c0_0] : memref<16x16xbf16, #tpu.memory_space<vmem>>, vector<16x16xbf16>
    %c0_1 = arith.constant 0 : index
    %c0_2 = arith.constant 0 : index
    %1 = vector.load %arg2[%c0_1, %c0_2] : memref<16x128xbf16, #tpu.memory_space<vmem>>, vector<16x128xbf16>
    %cst = arith.constant dense<0.000000e+00> : vector<16x128xf32>
    %2 = tpu.matmul %0, %1, %cst {dimension_numbers = #tpu.dot_dimension_numbers<[1], [0], [0], [1], [0, 0, 1, 1], [], []>} : vector<16x16xbf16>, vector<16x128xbf16>, vector<16x128xf32> -> vector<16x128xf32>
    %c0_3 = arith.constant 0 : index
    %c0_4 = arith.constant 0 : index
    %3 = vector.load %arg3[%c0_3, %c0_4] : memref<1x128xf32, #tpu.memory_space<vmem>>, vector<1x128xf32>
    %4 = vector.broadcast %3 : vector<1x128xf32> to vector<16x128xf32>
    %5 = arith.addf %2, %4 : vector<16x128xf32>
    %cst_5 = arith.constant 0.000000e+00 : f32
    %6 = vector.broadcast %cst_5 : f32 to vector<16x128xf32>
    %7 = arith.maximumf %5, %6 : vector<16x128xf32>
    %8 = arith.truncf %7 : vector<16x128xf32> to vector<16x128xbf16>
    %c0_6 = arith.constant 0 : index
    %c0_7 = arith.constant 0 : index
    %9 = vector.load %arg4[%c0_6, %c0_7] : memref<128x64xbf16, #tpu.memory_space<vmem>>, vector<128x64xbf16>
    %cst_8 = arith.constant dense<0.000000e+00> : vector<16x64xf32>
    %10 = tpu.matmul %8, %9, %cst_8 {dimension_numbers = #tpu.dot_dimension_numbers<[1], [0], [0], [1], [0, 0, 1, 1], [], []>} : vector<16x128xbf16>, vector<128x64xbf16>, vector<16x64xf32> -> vector<16x64xf32>
    %c0_9 = arith.constant 0 : index
    %c0_10 = arith.constant 0 : index
    %11 = vector.load %arg5[%c0_9, %c0_10] : memref<1x64xf32, #tpu.memory_space<vmem>>, vector<1x64xf32>
    %12 = vector.broadcast %11 : vector<1x64xf32> to vector<16x64xf32>
    %13 = arith.addf %10, %12 : vector<16x64xf32>
    %cst_11 = arith.constant 0.000000e+00 : f32
    %14 = vector.broadcast %cst_11 : f32 to vector<16x64xf32>
    %15 = arith.maximumf %13, %14 : vector<16x64xf32>
    %16 = arith.truncf %15 : vector<16x64xf32> to vector<16x64xbf16>
    %c0_12 = arith.constant 0 : index
    %c0_13 = arith.constant 0 : index
    %17 = vector.load %arg6[%c0_12, %c0_13] : memref<64x128xbf16, #tpu.memory_space<vmem>>, vector<64x128xbf16>
    %cst_14 = arith.constant dense<0.000000e+00> : vector<16x128xf32>
    %18 = tpu.matmul %16, %17, %cst_14 {dimension_numbers = #tpu.dot_dimension_numbers<[1], [0], [0], [1], [0, 0, 1, 1], [], []>} : vector<16x64xbf16>, vector<64x128xbf16>, vector<16x128xf32> -> vector<16x128xf32>
    %c0_15 = arith.constant 0 : index
    %c0_16 = arith.constant 0 : index
    %19 = vector.load %arg7[%c0_15, %c0_16] : memref<1x128xf32, #tpu.memory_space<vmem>>, vector<1x128xf32>
    %20 = vector.broadcast %19 : vector<1x128xf32> to vector<16x128xf32>
    %21 = arith.addf %18, %20 : vector<16x128xf32>
    %22 = math.tanh %21 : vector<16x128xf32>
    %c0_17 = arith.constant 0 : index
    %c0_18 = arith.constant 0 : index
    %23 = vector.load %arg8[%c0_17, %c0_18] : memref<16x128xf32, #tpu.memory_space<vmem>>, vector<16x128xf32>
    tpu.vector_store %arg8[%c0_17, %c0_18], %22 {strides = array<i32>} : memref<16x128xf32, #tpu.memory_space<vmem>>, vector<16x128xf32>,
    return
  }
  func.func @transform_0(%arg0: i32) -> (i32, i32) {
    %c0_i32 = arith.constant 0 : i32
    %c0_i32_0 = arith.constant 0 : i32
    return %arg0, %c0_i32 : i32, i32
  }
  func.func @transform_1(%arg0: i32) -> (i32, i32) {
    %c0_i32 = arith.constant 0 : i32
    %c0_i32_0 = arith.constant 0 : i32
    %c0_i32_1 = arith.constant 0 : i32
    return %c0_i32, %c0_i32_0 : i32, i32
  }
  func.func @transform_2(%arg0: i32) -> (i32, i32) {
    %c0_i32 = arith.constant 0 : i32
    %c0_i32_0 = arith.constant 0 : i32
    %c0_i32_1 = arith.constant 0 : i32
    return %c0_i32, %c0_i32_0 : i32, i32
  }
  func.func @transform_3(%arg0: i32) -> (i32, i32) {
    %c0_i32 = arith.constant 0 : i32
    %c0_i32_0 = arith.constant 0 : i32
    %c0_i32_1 = arith.constant 0 : i32
    return %c0_i32, %c0_i32_0 : i32, i32
  }
  func.func @transform_4(%arg0: i32) -> (i32, i32) {
    %c0_i32 = arith.constant 0 : i32
    %c0_i32_0 = arith.constant 0 : i32
    %c0_i32_1 = arith.constant 0 : i32
    return %c0_i32, %c0_i32_0 : i32, i32
  }
  func.func @transform_5(%arg0: i32) -> (i32, i32) {
    %c0_i32 = arith.constant 0 : i32
    %c0_i32_0 = arith.constant 0 : i32
    %c0_i32_1 = arith.constant 0 : i32
    return %c0_i32, %c0_i32_0 : i32, i32
  }
  func.func @transform_6(%arg0: i32) -> (i32, i32) {
    %c0_i32 = arith.constant 0 : i32
    %c0_i32_0 = arith.constant 0 : i32
    %c0_i32_1 = arith.constant 0 : i32
    return %c0_i32, %c0_i32_0 : i32, i32
  }
  func.func @transform_7(%arg0: i32) -> (i32, i32) {
    %c0_i32 = arith.constant 0 : i32
    %c0_i32_0 = arith.constant 0 : i32
    return %arg0, %c0_i32 : i32, i32
  }
}

</mosaic_0001>

<bundles_post_ra>
// kernel: tpu_custom_call.1
= control target key start
LH: loop header
LB: loop body
LE: loop exit
PB: predicated region body
PF: predicated region fallthrough
CT: control target
= control target key end

     0   :  { %v437_v1 = vmov 0.0   ;;  %vm438_vm0 = vmmov 0   ;;  %vm50_vm1 = vcmask 130048   ;;  %s545_s0 = inlined_call_operand.vmem [shape: bf16[16,16], index: 0, kind: input, shape index: {}]   ;;  %s546_s1 = inlined_call_operand.vmem [shape: bf16[16,128], index: 1, kind: input, shape index: {}]   ;;  %s547_s2 = inlined_call_operand.vmem [shape: f32[1,128], index: 2, kind: input, shape index: {}]   ;;  %s548_s3 = inlined_call_operand.vmem [shape: bf16[128,64], index: 3, kind: input, shape index: {}]   ;;  %s549_s4 = inlined_call_operand.vmem [shape: f32[1,64], index: 4, kind: input, shape index: {}]   ;;  %s550_s5 = inlined_call_operand.vmem [shape: bf16[64,128], index: 5, kind: input, shape index: {}]   ;;  %s551_s6 = inlined_call_operand.vmem [shape: f32[1,128], index: 6, kind: input, shape index: {}]   ;;  %s552_s7 = inlined_call_operand.hbm [shape: f32[16,128], index: 7, kind: output, shape index: {}]  }
   0x1   :  { %v395_v0 = vld [vmem:[%s546_s1] sm:$0xff]   ;;  %352 = vmatprep.subr.bf16.mxu0 %v437_v1  ;;  %358 = vmatprep.subr.bf16.mxu1 %v437_v1  ;;  %v398_v4 = vld [vmem:[%s548_s3 + $0x8] sm:$0xff]   ;;  %v399_v5 = vld [vmem:[%s548_s3 + $0x10] sm:$0xff]  }
   0x2   :  { %v396_v2 = vld [vmem:[%s545_s0] sm:$0xff]   ;;  %353 = vmatpush3.bf16.msra.mxu0 %v395_v0  ;;  %354 = vmatprep.mubr.msk.bf16.mxu0 %vm438_vm0, %v437_v1  ;;  %v400_v6 = vld [vmem:[%s548_s3 + $0x18] sm:$0xff]  }
   0x3   :  { %v397_v3 = vld [vmem:[%s548_s3] sm:$0xff]   ;;  %374 = vmatprep.mubr.msk.bf16.mxu1 %vm438_vm0, %v437_v1  ;;  %378 = vmatprep.subr.bf16.mxu0 %v437_v1 }
   0x4   :  { %359 = vmatpush3.bf16.msra.mxu1 %v397_v3 }
   0x5   :  { %355 = vmatmul.mubr.msk.bf16.vlgmr.msra.gmra.mrb[0].mxu0 %vm50_vm1, %v396_v2  ;;  %360 = vmatprep.subr.bf16.mxu1 %v437_v1 }
   0x6   :  { %386 = vmatprep.mubr.msk.bf16.mxu0 %vm438_vm0, %v437_v1 }
   0x8   :  { %361 = vmatpush3.bf16.msra.mxu1 %v398_v4 }
   0x9   :  { %362 = vmatprep.subr.bf16.mxu1 %v437_v1 }
   0xc   :  { %363 = vmatpush3.bf16.msra.mxu1 %v399_v5 }
   0xd   :  { %12 = vsyncpa [#allocation3], 0  ;;  %364 = vmatprep.subr.bf16.mxu1 %v437_v1  ;;  %v401_v7 = vld [vmem:[%s548_s3 + $0x20] sm:$0xff]   ;;  %v402_v8 = vld [vmem:[%s548_s3 + $0x28] sm:$0xff]   ;;  %vm252_vm2 = vcmask 523264  }
   0xe   :  { %v403_v9 = vld [vmem:[%s548_s3 + $0x30] sm:$0xff]   ;;  %v404_v10 = vld [vmem:[%s548_s3 + $0x38] sm:$0xff]   ;;  %v405_v11 = vld [vmem:[%s550_s5] sm:$0xff]  }
   0xf   :  { %379 = vmatpush3.bf16.msra.mxu0 %v405_v11  ;;  %v406_v12 = vld [vmem:[%s550_s5 + $0x8] sm:$0xff]   ;;  %v317_v13 = vld [vmem:[%s547_s2] ss:$0 sm:$0xff]  ;;  %v407_v23 = vld [vmem:[%s550_s5 + $0x10] sm:$0xff]  }
  0x10   :  { %365 = vmatpush3.bf16.msra.mxu1 %v400_v6  ;;  %380 = vmatprep.subr.bf16.mxu0 %v437_v1  ;;  %v408_v24 = vld [vmem:[%s550_s5 + $0x18] sm:$0xff]   ;;  %v321_v25 = vld [vmem:[%s549_s4] ss:$0 sm:$0xff]  ;;  %s439_s4 = smov [#allocation2]  }
  0x11   :  { %366 = vmatprep.subr.bf16.mxu1 %v437_v1  ;;  %v330_v35 = vld [vmem:[%s551_s6] ss:$0 sm:$0xff]  ;;  %s306_s5 = sshll.u32 %s439_s4, 4  ;;  %s307_s5 = int_to_ptr.vmem [resolvable:$true] %s306_s5 }
  0x12   :  { %s413_s1 = scalar_lea.vmem %s307_s5, 256  ;;  %p418_p1 = scmp.lt.s32.totalorder %s307_s5, %s307_s5 }
  0x13   :  { %381 = vmatpush3.bf16.msra.mxu0 %v406_v12  ;;  %p414_p0 = scmp.ne.s32.totalorder %s307_s5, %s413_s1  ;;  %p419_p2 = scmp.lt.s32.totalorder %s413_s1, %s413_s1 }
  0x14   :  { %367 = vmatpush3.bf16.msra.mxu1 %v401_v7  ;;  %382 = vmatprep.subr.bf16.mxu0 %v437_v1 }
  0x15   :  { %368 = vmatprep.subr.bf16.mxu1 %v437_v1  ;;  %p420_p3 = por %p419_p2, %p418_p1 }
  0x17   :  { %383 = vmatpush3.bf16.msra.mxu0 %v407_v23  ;;  %p421_p4 = pnand %p420_p3, %p414_p0 }
  0x18   :  { %369 = vmatpush3.bf16.msra.mxu1 %v402_v8  ;;  %384 = vmatprep.subr.bf16.mxu0 %v437_v1 }
  0x19   :  { %370 = vmatprep.subr.bf16.mxu1 %v437_v1 }
  0x1b   :  { %385 = vmatpush3.bf16.msra.mxu0 %v408_v24 }
  0x1c   :  { %371 = vmatpush3.bf16.msra.mxu1 %v403_v9 }
  0x1d   :  { %372 = vmatprep.subr.bf16.mxu1 %v437_v1 }
  0x20   :  { %373 = vmatpush3.bf16.msra.mxu1 %v404_v10 }
  0xd8   :  { %v88_v14 = vpop.f32.mrb[0].mxu0 }
  0xd9   :  { %v89_v15 = vadd.f32 %v317_v13, %v88_v14  ;;  %v356_v16 = vpop.f32.mrb[1].mxu0 }
  0xda   :  { %v91_v17 = vpop.f32.mrb[2].mxu0 }
  0xdb   :  { %v92_v18 = vadd.f32 %v317_v13, %v91_v17  ;;  %v357_v19 = vpop.f32.mrb[3].mxu0  ;;  %v95_v20 = vmax.f32 %v89_v15, 0.0 }
  0xdd   :  { %v96_v21 = vmax.f32 %v92_v18, 0.0 }
  0xdf   :  { %v97_v22 = vpack.c.bf16 %v96_v21, %v95_v20 }
  0xe1   :  { %375 = vmatmul.mubr.bf16.vlgmr.msra.gmra.mrb[0].mxu1 %v97_v22 }
 0x1b4   :  { %v203_v26 = vpop.f32.mrb[0].mxu1 }
 0x1b5   :  { %v204_v27 = vadd.f32 %v321_v25, %v203_v26  ;;  %v376_v28 = vpop.f32.mrb[1].mxu1 }
 0x1b6   :  { %v206_v29 = vpop.f32.mrb[2].mxu1 }
 0x1b7   :  { %v207_v30 = vadd.f32 %v321_v25, %v206_v29  ;;  %v377_v31 = vpop.f32.mrb[3].mxu1  ;;  %v210_v32 = vmax.f32 %v204_v27, 0.0 }
 0x1b9   :  { %v211_v33 = vmax.f32 %v207_v30, 0.0 }
 0x1bb   :  { %v212_v34 = vpack.c.bf16 %v211_v33, %v210_v32 }
 0x1bd   :  { %387 = vmatmul.mubr.msk.bf16.vlgmr.msra.gmra.mrb[4].mxu0 %vm252_vm2, %v212_v34 }
 0x290   :  { %v290_v36 = vpop.f32.mrb[4].mxu0 }
 0x291   :  { %v291_v37 = vadd.f32 %v330_v35, %v290_v36  ;;  %v388_v38 = vpop.f32.mrb[5].mxu0 }
 0x292   :  { %v293_v39 = vpop.f32.mrb[6].mxu0 }
 0x293   :  { %409 = vtanh.f32 %v291_v37  ;;  %v294_v40 = vadd.f32 %v330_v35, %v293_v39  ;;  %v389_v41 = vpop.f32.mrb[7].mxu0 }
 0x295   :  { %411 = vtanh.f32 %v294_v40 }
 0x29d   :  { %v410_v42 = vpop.eup %409 }
 0x29e   :  { %299 = vst [vmem:[#allocation2] sm:$0xff] %v410_v42 }
 0x29f   :  { %v412_v43 = vpop.eup %411 }
 0x2a0   :  { %300 = vst [vmem:[#allocation2 + $0x8] sm:$0xff] %v412_v43 }
 0x2a1   :  { %424 = shalt.err (!%p421_p4)
}
 0x2a2   :  { %s425_s8 = scalar_lea.hbm %s552_s7, 256 }
 0x2a3   :  { %p426_p5 = scmp.ne.s32.totalorder %s552_s7, %s425_s8  ;;  %p429_p6 = scmp.lt.u32.totalorder %s425_s8, %s552_s7 }
 0x2a5   :  { %p431_p7 = pnand %p429_p6, %p426_p5 }
 0x2a7   :  { %434 = shalt.err (!%p431_p7)
}
 0x2a8   :  { %s440_s13 = smov 128   ;;  %s441_s14 = smov 8  }
 0x2a9   :  { %312 = dma.vmem_to_hbm [thread:$0]  %s307_s5, 256, %s552_s7, [#allocation3], %s440_s13, %s440_s13, %s441_s14  }
 0x2aa   :  { %435 = dma.done.wait [#allocation3], 256  }
 0x2ab   :  { %436 = vsyncadd [#allocation3], 4294967040 }
 0x2ac   :  { %316 = vsyncpa [#allocation3], 1 }

</bundles_post_ra>
